<compile_context>
chip_gen: v5e
topology: v5e:2x2
jax: 0.10.0
libtpu: 0.0.40
codegen_flags: <defaults>
</compile_context>

<pallas_src>
import jax
import jax.numpy as jnp
from jax.experimental import pallas as pl
from jax.experimental.pallas import tpu as pltpu


def _attention_kernel(enc_ref, hproj_ref, we_ref, v_ref, o_ref):
    # enc_ref  : (TB*S, H)  encoder rows, batch-major / seq-minor
    # hproj_ref: (TB, H)    hidden @ W_h.T + b   for this batch tile
    # we_ref   : (H, H)     W_e.T (encoder half of attn weight, pre-transposed)
    # v_ref    : (1, H)     scoring vector
    # o_ref    : (TB, S)    softmax attention weights (lane-dense in S)
    tb, s = o_ref.shape
    h = we_ref.shape[0]

    # Energy projection: a single 2D MXU matmul over all TB*S rows.
    e_proj = jnp.dot(enc_ref[...], we_ref[...],
                     preferred_element_type=jnp.float32)            # (TB*S, H)
    energy = jnp.tanh(e_proj.reshape(tb, s, h) + hproj_ref[...][:, None, :])

    # Score: v . energy  -> VPU multiply + lane reduction (no transpose / MXU).
    scores = jnp.sum(energy * v_ref[...][None, :, :], axis=-1)      # (TB, S)

    # Numerically stable softmax over the sequence (lane) axis.
    m = jnp.max(scores, axis=-1, keepdims=True)
    e = jnp.exp(scores - m)
    denom = jnp.sum(e, axis=-1, keepdims=True)
    r = pl.reciprocal(denom, approx=True)      # EUP slot, nearly free
    r = r * (2.0 - denom * r)                  # one Newton step -> f32-accurate
    o_ref[...] = (e * r).astype(o_ref.dtype)


def _choose_batch_tile(batch, seq, target_rows=512):
    """Pick TB | B with TB % 8 == 0 (sublane-aligned blocks) or TB == B,
    targeting roughly `target_rows` matmul rows per grid step."""
    cands = [d for d in range(1, batch + 1)
             if batch % d == 0 and (d % 8 == 0 or d == batch)]
    good = [d for d in cands if d * seq <= target_rows]
    return max(good) if good else min(cands)


def attention_forward(hidden, encoder_outputs, attn_w, attn_b, v):
    """hidden: (B,H) f32, encoder_outputs: (S,B,H) f32 -> (B,S) f32."""
    S, B, H = encoder_outputs.shape

    # Split Linear(2H -> H): the hidden half is a tiny (B,H)x(H,H) matmul done
    # once here, so the kernel never sees the hidden broadcast or the concat.
    w_h = attn_w[:, :H]                                    # (H, H)
    w_e_t = attn_w[:, H:].T                                # (H, H)
    h_proj = hidden @ w_h.T + attn_b[None, :]              # (B, H)

    # Batch-major encoder rows, flattened so each grid step gets a contiguous
    # (TB*S, H) slab for one 2D matmul.
    # TODO(synk): a fused producer emitting batch-major activations would avoid
    # this standalone (S,B,H)->(B,S,H) transpose pass over HBM.
    enc_rows = jnp.transpose(encoder_outputs, (1, 0, 2)).reshape(B * S, H)

    tb = _choose_batch_tile(B, S)
    grid = (B // tb,)

    # TODO(synk): for very large S (v7x's 64 MiB VMEM) add an S grid axis
    # (marked "arbitrary") with an online-softmax m/l accumulator instead of
    # one monolithic S block.
    out = pl.pallas_call(
        _attention_kernel,
        out_shape=jax.ShapeDtypeStruct((B, S), jnp.float32),
        grid_spec=pltpu.PrefetchScalarGridSpec(
            num_scalar_prefetch=0,
            grid=grid,
            in_specs=[
                pl.BlockSpec((tb * S, H), lambda i: (i, 0)),   # encoder rows
                pl.BlockSpec((tb, H), lambda i: (i, 0)),       # h_proj tile
                pl.BlockSpec((H, H), lambda i: (0, 0)),        # W_e.T (resident)
                pl.BlockSpec((1, H), lambda i: (0, 0)),        # v (resident)
            ],
            out_specs=pl.BlockSpec((tb, S), lambda i: (i, 0)),
        ),
        compiler_params=pltpu.CompilerParams(
            dimension_semantics=("parallel",)),
        cost_estimate=pl.CostEstimate(
            flops=2 * B * S * H * H + 4 * B * S * H,
            transcendentals=B * S * (H + 1),
            bytes_accessed=4 * (B * S * H + B * H + H * H + H + B * S)),
    )(enc_rows, h_proj, w_e_t, v.reshape(1, H))
    return out


def _reference(hidden, encoder_outputs, attn_w, attn_b, v):
    S, B, H = encoder_outputs.shape
    enc = jnp.transpose(encoder_outputs, (1, 0, 2))
    hid = jnp.broadcast_to(hidden[:, None, :], (B, S, H))
    cat = jnp.concatenate([hid, enc], axis=2)
    energy = jnp.tanh(cat @ attn_w.T + attn_b)                     # (B, S, H)
    scores = jnp.einsum("bsh,h->bs", energy, v)
    return jax.nn.softmax(scores, axis=1)


if __name__ == "__main__":
    B, S, H = 2, 8, 32

    key = jax.random.PRNGKey(0)
    k_hidden, k_enc, k_w, k_b, k_v = jax.random.split(key, 5)

    hidden = jax.random.normal(k_hidden, (B, H), dtype=jnp.float32)
    encoder_outputs = jax.random.normal(k_enc, (S, B, H), dtype=jnp.float32)

    # Deterministic parameter init mirroring nn.Linear(2H, H) + nn.Parameter(rand(H)).
    bound = 1.0 / jnp.sqrt(2.0 * H)
    attn_w = jax.random.uniform(k_w, (H, 2 * H), jnp.float32, -bound, bound)
    attn_b = jax.random.uniform(k_b, (H,), jnp.float32, -bound, bound)
    v = jax.random.uniform(k_v, (H,), jnp.float32, 0.0, 1.0)

    out = attention_forward(hidden, encoder_outputs, attn_w, attn_b, v)
    out = jax.block_until_ready(out)

    ref = _reference(hidden, encoder_outputs, attn_w, attn_b, v)
    assert out.shape == (B, S)
    assert jnp.allclose(out, ref, atol=1e-5, rtol=1e-5), "mismatch vs reference"
    assert jnp.allclose(jnp.sum(out, axis=1), 1.0, atol=1e-5)

    print("KERNEL_OK")
</pallas_src>

<mosaic_0001>
module attributes {stable_mosaic.version = 11 : i64} {
  func.func @_attention_kernel(%arg0: i32, %arg1: memref<16x32xf32, #tpu.memory_space<vmem>>, %arg2: memref<2x32xf32, #tpu.memory_space<vmem>>, %arg3: memref<32x32xf32, #tpu.memory_space<vmem>>, %arg4: memref<1x32xf32, #tpu.memory_space<vmem>>, %arg5: memref<2x8xf32, #tpu.memory_space<vmem>>) attributes {dimension_semantics = [#tpu.dimension_semantics<parallel>], iteration_bounds = array<i64: 1>, scalar_prefetch = 0 : i64, scratch_operands = 0 : i64, tpu.core_type = #tpu.core_type<tc>, window_params = [{transform_indices = @transform_0, window_bounds = array<i64: 16, 32>}, {transform_indices = @transform_1, window_bounds = array<i64: 2, 32>}, {pipeline_mode = #tpu.pipeline_mode<synchronous>, transform_indices = @transform_2, window_bounds = array<i64: 32, 32>}, {pipeline_mode = #tpu.pipeline_mode<synchronous>, transform_indices = @transform_3, window_bounds = array<i64: 1, 32>}, {transform_indices = @transform_4, window_bounds = array<i64: 2, 8>}]} {
    %c0 = arith.constant 0 : index
    %c0_0 = arith.constant 0 : index
    %0 = vector.load %arg1[%c0, %c0_0] : memref<16x32xf32, #tpu.memory_space<vmem>>, vector<16x32xf32>
    %c0_1 = arith.constant 0 : index
    %c0_2 = arith.constant 0 : index
    %1 = vector.load %arg3[%c0_1, %c0_2] : memref<32x32xf32, #tpu.memory_space<vmem>>, vector<32x32xf32>
    %cst = arith.constant dense<0.000000e+00> : vector<16x32xf32>
    %2 = tpu.matmul %0, %1, %cst {dimension_numbers = #tpu.dot_dimension_numbers<[1], [0], [0], [1], [0, 0, 1, 1], [], []>} : vector<16x32xf32>, vector<32x32xf32>, vector<16x32xf32> -> vector<16x32xf32>
    %3 = vector.shape_cast %2 : vector<16x32xf32> to vector<2x8x32xf32>
    %c0_3 = arith.constant 0 : index
    %c0_4 = arith.constant 0 : index
    %4 = vector.load %arg2[%c0_3, %c0_4] : memref<2x32xf32, #tpu.memory_space<vmem>>, vector<2x32xf32>
    %5 = vector.shape_cast %4 : vector<2x32xf32> to vector<2x1x32xf32>
    %6 = vector.broadcast %5 : vector<2x1x32xf32> to vector<2x8x32xf32>
    %7 = arith.addf %3, %6 : vector<2x8x32xf32>
    %8 = math.tanh %7 : vector<2x8x32xf32>
    %c0_5 = arith.constant 0 : index
    %c0_6 = arith.constant 0 : index
    %9 = vector.load %arg4[%c0_5, %c0_6] : memref<1x32xf32, #tpu.memory_space<vmem>>, vector<1x32xf32>
    %10 = vector.shape_cast %9 : vector<1x32xf32> to vector<1x1x32xf32>
    %11 = vector.broadcast %10 : vector<1x1x32xf32> to vector<2x8x32xf32>
    %12 = arith.mulf %8, %11 : vector<2x8x32xf32>
    %cst_7 = arith.constant dense<0.000000e+00> : vector<2x8xf32>
    %13 = vector.multi_reduction <add>, %12, %cst_7 [2] : vector<2x8x32xf32> to vector<2x8xf32>
    %cst_8 = arith.constant dense<0xFF800000> : vector<2xf32>
    %14 = vector.multi_reduction <maximumf>, %13, %cst_8 [1] : vector<2x8xf32> to vector<2xf32>
    %15 = vector.shape_cast %14 : vector<2xf32> to vector<2x1xf32>
    %16 = vector.broadcast %15 : vector<2x1xf32> to vector<2x8xf32>
    %17 = arith.subf %13, %16 : vector<2x8xf32>
    %18 = math.exp %17 : vector<2x8xf32>
    %cst_9 = arith.constant dense<0.000000e+00> : vector<2xf32>
    %19 = vector.multi_reduction <add>, %18, %cst_9 [1] : vector<2x8xf32> to vector<2xf32>
    %20 = vector.shape_cast %19 : vector<2xf32> to vector<2x1xf32>
    %21 = tpu.reciprocal %20 {approx = true} : vector<2x1xf32> -> vector<2x1xf32>
    %22 = arith.mulf %20, %21 : vector<2x1xf32>
    %cst_10 = arith.constant 2.000000e+00 : f32
    %23 = vector.broadcast %cst_10 : f32 to vector<2x1xf32>
    %24 = arith.subf %23, %22 : vector<2x1xf32>
    %25 = arith.mulf %21, %24 : vector<2x1xf32>
    %26 = vector.broadcast %25 : vector<2x1xf32> to vector<2x8xf32>
    %27 = arith.mulf %18, %26 : vector<2x8xf32>
    %c0_11 = arith.constant 0 : index
    %c0_12 = arith.constant 0 : index
    %28 = vector.load %arg5[%c0_11, %c0_12] : memref<2x8xf32, #tpu.memory_space<vmem>>, vector<2x8xf32>
    tpu.vector_store %arg5[%c0_11, %c0_12], %27 {strides = array<i32>} : memref<2x8xf32, #tpu.memory_space<vmem>>, vector<2x8xf32>,
    return
  }
  func.func @transform_0(%arg0: i32) -> (i32, i32) {
    %c0_i32 = arith.constant 0 : i32
    %c0_i32_0 = arith.constant 0 : i32
    return %arg0, %c0_i32 : i32, i32
  }
  func.func @transform_1(%arg0: i32) -> (i32, i32) {
    %c0_i32 = arith.constant 0 : i32
    %c0_i32_0 = arith.constant 0 : i32
    return %arg0, %c0_i32 : i32, i32
  }
  func.func @transform_2(%arg0: i32) -> (i32, i32) {
    %c0_i32 = arith.constant 0 : i32
    %c0_i32_0 = arith.constant 0 : i32
    %c0_i32_1 = arith.constant 0 : i32
    return %c0_i32, %c0_i32_0 : i32, i32
  }
  func.func @transform_3(%arg0: i32) -> (i32, i32) {
    %c0_i32 = arith.constant 0 : i32
    %c0_i32_0 = arith.constant 0 : i32
    %c0_i32_1 = arith.constant 0 : i32
    return %c0_i32, %c0_i32_0 : i32, i32
  }
  func.func @transform_4(%arg0: i32) -> (i32, i32) {
    %c0_i32 = arith.constant 0 : i32
    %c0_i32_0 = arith.constant 0 : i32
    return %arg0, %c0_i32 : i32, i32
  }
}

</mosaic_0001>

<bundles_post_ra>
// kernel: tpu_custom_call.1
= control target key start
LH: loop header
LB: loop body
LE: loop exit
PB: predicated region body
PF: predicated region fallthrough
CT: control target
= control target key end

     0   :  { %9 = vsyncpa [#allocation3], 0  ;;  %s389_s0 = inlined_call_operand.hbm [shape: f32[16,32], index: 0, kind: input, shape index: {}]   ;;  %s390_s1 = inlined_call_operand.hbm [shape: f32[2,32], index: 1, kind: input, shape index: {}]   ;;  %s391_s2 = inlined_call_operand.hbm [shape: f32[32,32], index: 2, kind: input, shape index: {}]   ;;  %s392_s3 = inlined_call_operand.vmem [shape: f32[1,32], index: 3, kind: input, shape index: {}]   ;;  %s393_s4 = inlined_call_operand.hbm [shape: f32[2,8], index: 4, kind: output, shape index: {}]  }
   0x1   :  { %10 = vsyncpa [#allocation6], 0  ;;  %s30_s17 = sshll.u32 %s390_s1, 4  ;;  %s31_s17 = int_to_ptr.hbm [resolvable:$true] %s30_s17 }
   0x2   :  { %11 = vsyncpa [#allocation4], 0  ;;  %s332_s18 = smov [#allocation5]   ;;  %s16_s22 = sshll.u32 %s389_s0, 4  ;;  %s17_s22 = int_to_ptr.hbm [resolvable:$true] %s16_s22 }
   0x3   :  { %s32_s19 = sshll.u32 %s332_s18, 4  ;;  %s333_s23 = smov [#allocation2]   ;;  %s33_s19 = int_to_ptr.vmem [resolvable:$true] %s32_s19 }
   0x4   :  { %35 = dma.hbm_to_vmem [thread:$0]  %s31_s17, 32, %s33_s19, [#allocation6]  }
   0x5   :  { %s18_s24 = sshll.u32 %s333_s23, 4  ;;  %s334_s25 = smov 128   ;;  %s19_s24 = int_to_ptr.vmem [resolvable:$true] %s18_s24 }
   0x6   :  { %s335_s26 = smov 8   ;;  %s40_s1 = sshll.u32 %s391_s2, 4  ;;  %s41_s1 = int_to_ptr.hbm [resolvable:$true] %s40_s1 }
   0x7   :  { %24 = dma.hbm_to_vmem [thread:$0]  %s17_s22, 256, %s19_s24, [#allocation3], %s334_s25, %s334_s25, %s335_s26  }
   0x8   :  { %s336_s29 = smov [#allocation7]  }
   0x9   :  { %s42_s30 = sshll.u32 %s336_s29, 4  ;;  %s43_s30 = int_to_ptr.vmem [resolvable:$true] %s42_s30 }
   0xa   :  { %48 = dma.hbm_to_vmem [thread:$0]  %s41_s1, 512, %s43_s30, [#allocation6], %s334_s25, %s334_s25, %s335_s26  }
   0xb   :  { %326 = dma.done.wait [#allocation3], 256  }
   0xc   :  { %327 = vsyncadd [#allocation3], 4294967040 }
   0xd   :  { %328 = dma.done.wait [#allocation6], 544  }
   0xe   :  { %329 = vsyncadd [#allocation6], 4294966752  ;;  %v68_v0 = vld [vmem:[#allocation7 + $0x18] sm:$0xff]  ;;  %v67_v1 = vld [vmem:[#allocation7 + $0x10] sm:$0xff]  ;;  %vm69_vm0 = vcmask 261120   ;;  %v124_v22 = vlaneseq  ;;  %vm128_vm1 = vcmask 1041409  }
   0xf   :  { %88 = vmatpush.msra.mxu0 %v68_v0  ;;  %205 = vmatpush.msra.mxu1 %v68_v0  ;;  %v66_v2 = vld [vmem:[#allocation7 + $0x8] sm:$0xff]  ;;  %v65_v3 = vld [vmem:[#allocation7] sm:$0xff]  ;;  %v64_v5 = vld [vmem:[#allocation2 + $0x8] sm:$0xff]  ;;  %vm131_vm2 = vcmask 58368   ;;  %v337_v29 = vmov 0   ;;  %s192_s8 = sshll.u32 %s393_s4, 4  ;;  %s193_s8 = int_to_ptr.hbm [resolvable:$true] %s192_s8 }
  0x10   :  { %v63_v4 = vld [vmem:[#allocation2] sm:$0xff]  ;;  %v99_v6 = vld [vmem:[#allocation5] sm:$0x3]  ;;  %v125_v23 = vand.u32 127, %v124_v22  ;;  %217 = vset.pattern.permute.xlu2 %v337_v29  ;;  %216 = vset.pattern.permute.xlu1 %v337_v29 }
  0x11   :  { %89 = vmatpush.msra.mxu0 %v67_v1  ;;  %206 = vmatpush.msra.mxu1 %v67_v1  ;;  %v101_v7 = vrot.slane %v99_v6, 1  ;;  %v102_v8 = vperm.slane %v99_v6, 0  ;;  %v219_v14 = vld [vmem:[%s392_s3] ss:$0 sm:$0xff]  ;;  %s338_s3 = smov [#allocation8]  }
  0x12   :  { %218 = vset.pattern.permute.xlu0 %v337_v29  ;;  %s190_s5 = sshll.u32 %s338_s3, 4  ;;  %s191_s5 = int_to_ptr.vmem [resolvable:$true] %s190_s5 }
  0x13   :  { %90 = vmatpush.msra.mxu0 %v66_v2  ;;  %207 = vmatpush.msra.mxu1 %v66_v2  ;;  %v103_v9 = vperm.slane %v101_v7, 0 }
  0x15   :  { %91 = vmatpush.msra.mxu0 %v65_v3  ;;  %208 = vmatpush.msra.mxu1 %v65_v3 }
  0x16   :  { %203 = vmatmul.msk.f32.vlgmr.msra.gmra.mxu0 %vm69_vm0, %v63_v4  ;;  %204 = vmatmul.msk.f32.vlgmr.msra.gmra.mxu1 %vm69_vm0, %v64_v5 }
  0x93   :  { %v93_v10 = vpop.f32.mrf.mxu0  ;;  %v96_v11 = vpop.f32.mrf.mxu1 }
  0x94   :  { %v106_v12 = vadd.f32 %v102_v8, %v93_v10  ;;  %v107_v13 = vadd.f32 %v103_v9, %v96_v11 }
  0x96   :  { %220 = vtanh.f32 %v106_v12 }
  0x97   :  { %222 = vtanh.f32 %v107_v13 }
  0x9c   :  { %v221_v15 = vpop.eup %220 }
  0x9d   :  { %v114_v16 = vmul.f32 %v221_v15, %v219_v14  ;;  %v223_v17 = vpop.eup %222 }
  0x9e   :  { %v115_v19 = vmul.f32 %v223_v17, %v219_v14 }
  0x9f   :  { %v116_v18 = vsel %vm69_vm0, %v114_v16, 0.0 }
  0xa0   :  { %117 = vadd.xlane.f32.xlu0 %v116_v18  ;;  %v119_v20 = vsel %vm69_vm0, %v115_v19, 0.0 }
  0xa8   :  { %120 = vadd.xlane.f32.xlu0 %v119_v20 }
 0x113   :  { %v118_v21 = vpop.xlane.xlu0 %117 }
 0x114   :  { %v126_v25 = vperm.slane %v118_v21, %v125_v23 }
 0x11b   :  { %v121_v24 = vpop.xlane.xlu0 %120 }
 0x11c   :  { %v127_v26 = vperm.slane %v121_v24, %v125_v23 }
 0x11e   :  { %v129_v27 = vsel %vm128_vm1, %v127_v26, %v126_v25 }
 0x11f   :  { %v132_v28 = vsel %vm131_vm2, %v129_v27, -inf }
 0x120   :  { %133 = vmax.xlane.f32.xlu1 %v132_v28 }
 0x193   :  { %v134_v30 = vpop.xlane.xlu1 %133 }
 0x194   :  { %v136_v31 = vperm.slane %v134_v30, 0  ;;  %v137_v32 = vperm.slane %v134_v30, 1 }
 0x196   :  { %v140_v33 = vsub.f32 %v118_v21, %v136_v31  ;;  %v141_v34 = vsub.f32 %v121_v24, %v137_v32 }
 0x198   :  { %v142_v35 = vmul.f32 1.442695, %v140_v33  ;;  %v144_v36 = vmul.f32 1.442695, %v141_v34 }
 0x19a   :  { %224 = vpow2.f32 %v142_v35 }
 0x19b   :  { %226 = vpow2.f32 %v144_v36 }
 0x1a0   :  { %v225_v37 = vpop.eup %224 }
 0x1a1   :  { %v227_v38 = vpop.eup %226  ;;  %149 = vperm.xlu1 %216, %v225_v37  }
 0x1a2   :  { %152 = vperm.xlu2 %217, %v227_v38  }
 0x1fc   :  { %v153_v39 = vpop.permute.xlu2 %152 }
 0x1fd   :  { %v155_v41 = vperm.slane %v153_v39, %v125_v23 }
 0x213   :  { %v150_v40 = vpop.permute.xlu1 %149 }
 0x214   :  { %v154_v42 = vperm.slane %v150_v40, %v125_v23 }
 0x216   :  { %v156_v43 = vsel %vm128_vm1, %v155_v41, %v154_v42 }
 0x217   :  { %v158_v44 = vsel %vm131_vm2, %v156_v43, 0.0 }
 0x218   :  { %159 = vadd.xlane.f32.xlu2 %v158_v44 }
 0x28b   :  { %v160_v45 = vpop.xlane.xlu2 %159 }
 0x28c   :  { %228 = vrcp.f32 %v160_v45 }
 0x292   :  { %v229_v46 = vpop.eup %228 }
 0x293   :  { %v162_v47 = vmul.f32 %v229_v46, %v160_v45 }
 0x295   :  { %v163_v48 = vsub.f32 2.0, %v162_v47 }
 0x297   :  { %v164_v49 = vmul.f32 %v229_v46, %v163_v48 }
 0x299   :  { %v166_v50 = vperm.slane %v164_v49, 0  ;;  %v167_v51 = vperm.slane %v164_v49, 1 }
 0x29b   :  { %v171_v52 = vmul.f32 %v227_v38, %v167_v51  ;;  %v170_v53 = vmul.f32 %v225_v37, %v166_v50 }
 0x29d   :  { %178 = vperm.xlu1 %216, %v171_v52   ;;  %175 = vperm.xlu0 %218, %v170_v53  }
 0x30f   :  { %v179_v54 = vpop.permute.xlu1 %178  ;;  %v176_v55 = vpop.permute.xlu0 %175 }
 0x310   :  { %v181_v56 = vperm.slane %v179_v54, %v125_v23  ;;  %v180_v57 = vperm.slane %v176_v55, %v125_v23 }
 0x312   :  { %v182_v58 = vsel %vm128_vm1, %v181_v56, %v180_v57 }
 0x313   :  { %184 = vst.msk [vmem:[#allocation8] sm:$0x3] %vm131_vm2, %v182_v58 }
 0x314   :  { %195 = dma.vmem_to_hbm [thread:$0]  %s191_s5, 32, %s193_s8, [#allocation4]  }
 0x315   :  { %330 = dma.done.wait [#allocation4], 32  }
 0x316   :  { %331 = vsyncadd [#allocation4], 4294967264 }
 0x317   :  { %200 = vsyncpa [#allocation3], 1 }
 0x318   :  { %201 = vsyncpa [#allocation6], 1 }
 0x319   :  { %202 = vsyncpa [#allocation4], 1 }

</bundles_post_ra>
